<compile_context>
chip_gen: v7x
topology: tpu7x:2x2x1
jax: 0.10.0
libtpu: 0.0.40
codegen_flags: <defaults>
</compile_context>

<pallas_src>
import jax
import jax.numpy as jnp
from jax.experimental import pallas as pl
from jax.experimental.pallas import tpu as pltpu


def _make_kl_kernel(inv_temperature: float):
    apply_temp = (inv_temperature != 1.0)

    def kl_kernel(pred_ref, tgt_ref, out_ref):
        # Zero this (batch, core) accumulator block at the start of its HW-tile sweep.
        @pl.when(pl.program_id(2) == 0)
        def _():
            out_ref[...] = jnp.zeros_like(out_ref)

        # Blocks are (1, C, TILE_R, 128); channel axis = 1.
        p = pred_ref[...].astype(jnp.float32)
        t = tgt_ref[...].astype(jnp.float32)
        if apply_temp:
            p = p * inv_temperature
            t = t * inv_temperature

        # log_softmax(pred / T) pieces (channel axis).
        p_max = jnp.max(p, axis=1, keepdims=True)
        p_shift = p - p_max
        p_sum = jnp.sum(jnp.exp(p_shift), axis=1, keepdims=True)

        # softmax(target / T) pieces via the analytic log-softmax identity.
        t_max = jnp.max(t, axis=1, keepdims=True)
        t_shift = t - t_max
        t_exp = jnp.exp(t_shift)
        t_sum = jnp.sum(t_exp, axis=1, keepdims=True)

        # Per-column KL, reduced over channels inside the kernel:
        #   sum_c softmax(t)_c * (log_softmax(t)_c - log_softmax(p)_c)
        # = [sum_c t_exp_c * (t_shift_c - p_shift_c)] / t_sum + (log p_sum - log t_sum)
        # (uses sum_c softmax(t)_c == 1).  Padded all-zero columns give exactly 0.
        weighted = jnp.sum(t_exp * (t_shift - p_shift), axis=1, keepdims=True)
        kl_col = weighted / t_sum + (jnp.log(p_sum) - jnp.log(t_sum))  # (1,1,TR,128)

        out_ref[...] += kl_col

    return kl_kernel


def _round_up(x: int, m: int) -> int:
    return ((x + m - 1) // m) * m


def kl_div_loss(prediction, target, *, temperature=1.0, scale_factor=1.0,
                max_rows_per_tile=None):
    """prediction, target: (N, C, H, W) float32/bfloat16.  Returns scalar f32 loss."""
    assert prediction.shape == target.shape
    N, C, H, W = prediction.shape
    HW = H * W

    # ---- chip-aware tile sizing -------------------------------------------------
    try:
        vmem_cap = int(pltpu.get_tpu_info().vmem_capacity_bytes)
    except Exception:
        vmem_cap = 64 * 1024 * 1024
    budget = min(vmem_cap // 2, 64 * 1024 * 1024)  # 32 MiB on v7x, 64 MiB on v5e/v6e

    # Per row of 128 lanes (f32, worst case): 2 inputs x 2 pipeline buffers + 2x accumulator.
    bytes_per_row = 2 * 2 * C * 128 * 4 + 2 * 128 * 4
    tile_r_cap = max(8, (budget // bytes_per_row) // 8 * 8)
    tile_r_cap = min(tile_r_cap, 1024)  # >= ~2 MiB/input block already at small C
    if max_rows_per_tile is not None:
        tile_r_cap = min(tile_r_cap, max(8, (int(max_rows_per_tile) // 8) * 8))

    R = pl.cdiv(HW, 128)  # rows of 128 lanes once HW is padded to a 128 multiple
    if R <= tile_r_cap:
        P, tiles_per_p, tile_r = 1, 1, int(R)          # single resident tile
    else:
        P = 2                                          # feed both v7x TensorCores
        chunks = pl.cdiv(R, tile_r_cap)
        chunks = pl.cdiv(chunks, P) * P                # chunks divisible by P
        tile_r = _round_up(pl.cdiv(R, chunks), 8)      # <= tile_r_cap by construction
        tiles_per_p = chunks // P
    R_total = P * tiles_per_p * tile_r
    HW_pad = R_total * 128

    # ---- re-layout: (N, C, HW) -> zero-pad -> (N, C, R_total, 128) ---------------
    pred3 = prediction.reshape(N, C, HW)
    tgt3 = target.reshape(N, C, HW)
    if HW_pad != HW:
        pad = HW_pad - HW
        pred3 = jnp.pad(pred3, ((0, 0), (0, 0), (0, pad)))
        tgt3 = jnp.pad(tgt3, ((0, 0), (0, 0), (0, pad)))
    pred4 = pred3.reshape(N, C, R_total, 128)
    tgt4 = tgt3.reshape(N, C, R_total, 128)

    kernel = _make_kl_kernel(1.0 / float(temperature))

    def in_map(i, p, j):
        return (i, 0, p * tiles_per_p + j, 0)

    vmem_limit = int(min(vmem_cap - 8 * 1024 * 1024, budget + 8 * 1024 * 1024))

    partials = pl.pallas_call(
        kernel,
        out_shape=jax.ShapeDtypeStruct((N, P, tile_r, 128), jnp.float32),
        grid_spec=pltpu.PrefetchScalarGridSpec(
            num_scalar_prefetch=0,
            grid=(N, P, tiles_per_p),
            in_specs=[
                pl.BlockSpec((1, C, tile_r, 128), in_map),
                pl.BlockSpec((1, C, tile_r, 128), in_map),
            ],
            out_specs=pl.BlockSpec((1, 1, tile_r, 128), lambda i, p, j: (i, p, 0, 0)),
        ),
        compiler_params=pltpu.CompilerParams(
            dimension_semantics=("parallel", "parallel", "arbitrary"),
            vmem_limit_bytes=vmem_limit,
        ),
    )(pred4, tgt4)

    # batchmean + T^2 + scale_factor applied once on the small partial tensor.
    t2_scale = (float(temperature) ** 2) * float(scale_factor) / float(N)
    return jnp.sum(partials) * jnp.float32(t2_scale)


def _reference(prediction, target, temperature=1.0, scale_factor=1.0):
    p = prediction.astype(jnp.float32) / temperature
    t = target.astype(jnp.float32) / temperature
    log_src = jax.nn.log_softmax(p, axis=1)
    log_tgt = jax.nn.log_softmax(t, axis=1)
    tgt = jnp.exp(log_tgt)
    kl = jnp.sum(tgt * (log_tgt - log_src)) / prediction.shape[0]
    return (temperature ** 2) * kl * scale_factor


if __name__ == "__main__":
    key = jax.random.PRNGKey(0)
    k1, k2, k3, k4, k5, k6 = jax.random.split(key, 6)

    # 1) Small case consistent with the module defaults (T, scale_factor exercised).
    N, C, H, W = 2, 4, 16, 16
    prediction = jax.random.normal(k1, (N, C, H, W), dtype=jnp.float32)
    target = jax.random.normal(k2, (N, C, H, W), dtype=jnp.float32)
    loss = kl_div_loss(prediction, target, temperature=2.0, scale_factor=1.5)
    loss = jax.block_until_ready(loss)
    ref = _reference(prediction, target, 2.0, 1.5)
    assert jnp.allclose(loss, ref, rtol=2e-4, atol=1e-5), (loss, ref)

    # 2) Non-power-of-2 channels, HW an exact multiple of 128, single tile.
    N2, C2, H2, W2 = 1, 3, 48, 48   # HW = 2304 = 18 * 128
    pred2 = jax.random.normal(k3, (N2, C2, H2, W2), dtype=jnp.float32)
    tgt2 = jax.random.normal(k4, (N2, C2, H2, W2), dtype=jnp.float32)
    loss2 = kl_div_loss(pred2, tgt2, temperature=1.0, scale_factor=1.0)
    loss2 = jax.block_until_ready(loss2)
    ref2 = _reference(pred2, tgt2, 1.0, 1.0)
    assert jnp.allclose(loss2, ref2, rtol=2e-4, atol=1e-5), (loss2, ref2)

    # 3) bf16 inputs + forced small tiles: exercises ragged-HW zero padding,
    #    the 2-way parallel tile split, and multi-tile accumulation.
    N3, C3, H3, W3 = 2, 5, 60, 60   # HW = 3600 -> R = 29 -> padded to 32 rows
    pred3 = jax.random.normal(k5, (N3, C3, H3, W3), dtype=jnp.float32).astype(jnp.bfloat16)
    tgt3 = jax.random.normal(k6, (N3, C3, H3, W3), dtype=jnp.float32).astype(jnp.bfloat16)
    loss3 = kl_div_loss(pred3, tgt3, temperature=1.0, scale_factor=2.0,
                        max_rows_per_tile=8)
    loss3 = jax.block_until_ready(loss3)
    ref3 = _reference(pred3, tgt3, 1.0, 2.0)
    assert jnp.allclose(loss3, ref3, rtol=2e-4, atol=1e-4), (loss3, ref3)

    print("KERNEL_OK")
</pallas_src>

<mosaic_0001>
module attributes {stable_mosaic.version = 11 : i64} {
  func.func @kl_kernel(%arg0: i32, %arg1: i32, %arg2: i32, %arg3: memref<1x4x2x128xf32, #tpu.memory_space<vmem>>, %arg4: memref<1x4x2x128xf32, #tpu.memory_space<vmem>>, %arg5: memref<1x1x2x128xf32, #tpu.memory_space<vmem>>) attributes {dimension_semantics = [#tpu.dimension_semantics<parallel>, #tpu.dimension_semantics<parallel>, #tpu.dimension_semantics<arbitrary>], iteration_bounds = array<i64: 2, 1, 1>, scalar_prefetch = 0 : i64, scratch_operands = 0 : i64, tpu.core_type = #tpu.core_type<tc>, window_params = [{transform_indices = @transform_0, window_bounds = array<i64: 1, 4, 2, 128>}, {transform_indices = @transform_1, window_bounds = array<i64: 1, 4, 2, 128>}, {transform_indices = @transform_2, window_bounds = array<i64: 1, 1, 2, 128>}]} {
    %c0_i32 = arith.constant 0 : i32
    %0 = arith.cmpi eq, %arg2, %c0_i32 : i32
    %1 = arith.extui %0 : i1 to i32
    %c0_i32_0 = arith.constant 0 : i32
    %2 = arith.cmpi ne, %1, %c0_i32_0 : i32
    scf.if %2 {
      %cst_22 = arith.constant 0.000000e+00 : f32
      %35 = vector.broadcast %cst_22 : f32 to vector<1x1x2x128xf32>
      %c0_23 = arith.constant 0 : index
      %c0_24 = arith.constant 0 : index
      %c0_25 = arith.constant 0 : index
      %c0_26 = arith.constant 0 : index
      %36 = vector.load %arg5[%c0_23, %c0_24, %c0_25, %c0_26] : memref<1x1x2x128xf32, #tpu.memory_space<vmem>>, vector<1x1x2x128xf32>
      tpu.vector_store %arg5[%c0_23, %c0_24, %c0_25, %c0_26], %35 {strides = array<i32>} : memref<1x1x2x128xf32, #tpu.memory_space<vmem>>, vector<1x1x2x128xf32>,
    } else {
    }
    %c0 = arith.constant 0 : index
    %c0_1 = arith.constant 0 : index
    %c0_2 = arith.constant 0 : index
    %c0_3 = arith.constant 0 : index
    %3 = vector.load %arg3[%c0, %c0_1, %c0_2, %c0_3] : memref<1x4x2x128xf32, #tpu.memory_space<vmem>>, vector<1x4x2x128xf32>
    %c0_4 = arith.constant 0 : index
    %c0_5 = arith.constant 0 : index
    %c0_6 = arith.constant 0 : index
    %c0_7 = arith.constant 0 : index
    %4 = vector.load %arg4[%c0_4, %c0_5, %c0_6, %c0_7] : memref<1x4x2x128xf32, #tpu.memory_space<vmem>>, vector<1x4x2x128xf32>
    %cst = arith.constant 5.000000e-01 : f32
    %5 = vector.broadcast %cst : f32 to vector<1x4x2x128xf32>
    %6 = arith.mulf %3, %5 : vector<1x4x2x128xf32>
    %cst_8 = arith.constant 5.000000e-01 : f32
    %7 = vector.broadcast %cst_8 : f32 to vector<1x4x2x128xf32>
    %8 = arith.mulf %4, %7 : vector<1x4x2x128xf32>
    %cst_9 = arith.constant dense<0xFF800000> : vector<1x2x128xf32>
    %9 = vector.multi_reduction <maximumf>, %6, %cst_9 [1] : vector<1x4x2x128xf32> to vector<1x2x128xf32>
    %10 = vector.shape_cast %9 : vector<1x2x128xf32> to vector<1x1x2x128xf32>
    %11 = vector.broadcast %10 : vector<1x1x2x128xf32> to vector<1x4x2x128xf32>
    %12 = arith.subf %6, %11 : vector<1x4x2x128xf32>
    %13 = math.exp %12 : vector<1x4x2x128xf32>
    %cst_10 = arith.constant dense<0.000000e+00> : vector<1x2x128xf32>
    %14 = vector.multi_reduction <add>, %13, %cst_10 [1] : vector<1x4x2x128xf32> to vector<1x2x128xf32>
    %15 = vector.shape_cast %14 : vector<1x2x128xf32> to vector<1x1x2x128xf32>
    %cst_11 = arith.constant dense<0xFF800000> : vector<1x2x128xf32>
    %16 = vector.multi_reduction <maximumf>, %8, %cst_11 [1] : vector<1x4x2x128xf32> to vector<1x2x128xf32>
    %17 = vector.shape_cast %16 : vector<1x2x128xf32> to vector<1x1x2x128xf32>
    %18 = vector.broadcast %17 : vector<1x1x2x128xf32> to vector<1x4x2x128xf32>
    %19 = arith.subf %8, %18 : vector<1x4x2x128xf32>
    %20 = math.exp %19 : vector<1x4x2x128xf32>
    %cst_12 = arith.constant dense<0.000000e+00> : vector<1x2x128xf32>
    %21 = vector.multi_reduction <add>, %20, %cst_12 [1] : vector<1x4x2x128xf32> to vector<1x2x128xf32>
    %22 = vector.shape_cast %21 : vector<1x2x128xf32> to vector<1x1x2x128xf32>
    %23 = arith.subf %19, %12 : vector<1x4x2x128xf32>
    %24 = arith.mulf %20, %23 : vector<1x4x2x128xf32>
    %cst_13 = arith.constant dense<0.000000e+00> : vector<1x2x128xf32>
    %25 = vector.multi_reduction <add>, %24, %cst_13 [1] : vector<1x4x2x128xf32> to vector<1x2x128xf32>
    %26 = vector.shape_cast %25 : vector<1x2x128xf32> to vector<1x1x2x128xf32>
    %27 = arith.divf %26, %22 : vector<1x1x2x128xf32>
    %28 = math.log %15 : vector<1x1x2x128xf32>
    %29 = math.log %22 : vector<1x1x2x128xf32>
    %30 = arith.subf %28, %29 : vector<1x1x2x128xf32>
    %31 = arith.addf %27, %30 : vector<1x1x2x128xf32>
    %c0_14 = arith.constant 0 : index
    %c0_15 = arith.constant 0 : index
    %c0_16 = arith.constant 0 : index
    %c0_17 = arith.constant 0 : index
    %32 = vector.load %arg5[%c0_14, %c0_15, %c0_16, %c0_17] : memref<1x1x2x128xf32, #tpu.memory_space<vmem>>, vector<1x1x2x128xf32>
    %33 = arith.addf %32, %31 : vector<1x1x2x128xf32>
    %c0_18 = arith.constant 0 : index
    %c0_19 = arith.constant 0 : index
    %c0_20 = arith.constant 0 : index
    %c0_21 = arith.constant 0 : index
    %34 = vector.load %arg5[%c0_18, %c0_19, %c0_20, %c0_21] : memref<1x1x2x128xf32, #tpu.memory_space<vmem>>, vector<1x1x2x128xf32>
    tpu.vector_store %arg5[%c0_18, %c0_19, %c0_20, %c0_21], %33 {strides = array<i32>} : memref<1x1x2x128xf32, #tpu.memory_space<vmem>>, vector<1x1x2x128xf32>,
    return
  }
  func.func @transform_0(%arg0: i32, %arg1: i32, %arg2: i32) -> (i32, i32, i32, i32) {
    %c1_i32 = arith.constant 1 : i32
    %0 = arith.muli %arg1, %c1_i32 : i32
    %1 = arith.addi %0, %arg2 : i32
    %c0_i32 = arith.constant 0 : i32
    %c0_i32_0 = arith.constant 0 : i32
    %c0_i32_1 = arith.constant 0 : i32
    return %arg0, %c0_i32, %1, %c0_i32_0 : i32, i32, i32, i32
  }
  func.func @transform_1(%arg0: i32, %arg1: i32, %arg2: i32) -> (i32, i32, i32, i32) {
    %c1_i32 = arith.constant 1 : i32
    %0 = arith.muli %arg1, %c1_i32 : i32
    %1 = arith.addi %0, %arg2 : i32
    %c0_i32 = arith.constant 0 : i32
    %c0_i32_0 = arith.constant 0 : i32
    %c0_i32_1 = arith.constant 0 : i32
    return %arg0, %c0_i32, %1, %c0_i32_0 : i32, i32, i32, i32
  }
  func.func @transform_2(%arg0: i32, %arg1: i32, %arg2: i32) -> (i32, i32, i32, i32) {
    %c0_i32 = arith.constant 0 : i32
    %c0_i32_0 = arith.constant 0 : i32
    %c0_i32_1 = arith.constant 0 : i32
    return %arg0, %arg1, %c0_i32, %c0_i32_0 : i32, i32, i32, i32
  }
}

</mosaic_0001>

<bundles_post_ra>
// kernel: tpu_custom_call.1
= control target key start
LH: loop header
LB: loop body
LE: loop exit
PB: predicated region body
PF: predicated region fallthrough
CT: control target
= control target key end

     0   :  { %7 = vsyncpa [#allocation3], 0  ;;  %s1005_s0 = inlined_call_operand.hbm [shape: f32[2,4,2,128], index: 0, kind: input, shape index: {}]   ;;  %s1006_s1 = inlined_call_operand.hbm [shape: f32[2,4,2,128], index: 1, kind: input, shape index: {}]   ;;  %s1007_s2 = inlined_call_operand.hbm [shape: f32[2,1,2,128], index: 2, kind: output, shape index: {}]  }
   0x1   :  { %9 = vsyncpa [#allocation3 + $0x1], 0 }
   0x2   :  { %10 = vsyncpa [#allocation6], 0 }
   0x3   :  { %12 = vsyncpa [#allocation6 + $0x1], 0 }
   0x4   :  { %13 = vsyncpa [#allocation4], 0 }
   0x5   :  { %15 = vsyncpa [#allocation4 + $0x1], 0  ;;  %s744_s9 = smov 0   ;;  %s746_s10 = smov 0  }
   0x6   :  { %s748_s11 = smov 0   ;;  %s750_s12 = smov 0  }
   0x7   :  { %s752_s13 = smov 0   ;;  %s754_s14 = smov 0  }
   0x8 LB: > { %s463_s15 = sadd.s32 4294967295, %s721_s14   ;;  %s464_s16 = sadd.s32 4294967294, %s721_s14   ;;  %s721_s14 = sphi %s754_s14, %s21_s14   ;;  %s717_s13 = sphi %s752_s13, %s1025_s13   ;;  %s713_s12 = sphi %s750_s12, %s1024_s12   ;;  %s709_s11 = sphi %s748_s11, %s1023_s11   ;;  %s705_s10 = sphi %s746_s10, %s1022_s10   ;;  %s701_s9 = sphi %s744_s9, %s1021_s9  }
   0x9   : > { %s40_s17 = sadd.s32 1, %s717_s13  ;;  %s51_s18 = sadd.s32 1, %s709_s11 }
   0xa   : > { %p42_p0 = scmp.ge.s32.totalorder %s40_s17, 2  ;;  %p58_p1 = scmp.ne.s32.totalorder %s709_s11, %s705_s10 }
   0xb   : > { %p59_p2 = scmp.eq.s32.totalorder %s721_s14, 0  ;;  %p64_p3 = scmp.ne.s32.totalorder %s705_s10, %s701_s9 }
   0xc   : > { %s1027_s17 = smov (%p42_p0, %s40_s17), 0  ;;  %p65_p5 = scmp.eq.s32.totalorder %s463_s15, 0 }
   0xd   : > { %p785_p4 = por %p59_p2, %p58_p1  ;;  %s46_s20 = ssub.s32 %s717_s13, %s1027_s17 }
   0xe   : > { %p120_p6 = scmp.eq.s32.totalorder %s463_s15, 1  ;;  %p49_p7 = scmp.eq.s32.totalorder %s46_s20, 0 }
   0xf   : > { %p791_p8 = por %p65_p5, %p64_p3  ;;  %p126_p10 = scmp.eq.s32.totalorder %s464_s16, 1 }
  0x10   : > { %p795_p9 = por %p120_p6, %p58_p1  ;;  %p500_p13 = scmp.lt.s32.totalorder %s721_s14, 2 }
  0x11   : > { %s1011_s21 = scalar_select %p791_p8, 1, 0 }
  0x12   : > { %s1012_s22 = scalar_select %p795_p9, 1, 0 }
  0x13   : > { %s800_s23 = scalar_select %p49_p7, %s709_s11, %s51_s18  }
  0x14   : > { %p802_p11 = por %p126_p10, %p64_p3  ;;  %s809_s25 = sand.u32 1, %s709_s11  }
  0x15   : > { %s467_s26 = sshll.u32 %s809_s25, 3  ;;  %s481_s27 = sshll.u32 %s717_s13, 7 }
  0x16   : > { %s1013_s24 = scalar_select %p802_p11, 1, 0 }
  0x17   : > { %s818_s30 = scalar_lea.hbm %s1005_s0, %s481_s27  ;;  %s150_s3 = scalar_lea.vmem [#allocation2], %s467_s26 }
  0x18   : > { %s159_s4 = sshll.u32 %s150_s3, 4  ;;  %p826_p0 = pnand %p500_p13, %p785_p4  ;;  %s822_s4 = int_to_ptr.vmem [resolvable:$true] %s159_s4 }
  0x19   : > { %s147_s6 = scalar_lea.sflag [#allocation3], %s809_s25  ;;  %s575_s7 = scalar_lea.hbm %s818_s30, 128 }
  0x1a   : > { %p576_p2 = scmp.ne.s32.totalorder %s818_s30, %s575_s7  ;;  %p577_p3 = pneg %p826_p0 }
  0x1b   : > { %s580_s16 = scalar_lea.hbm %s1005_s0, 256  ;;  %p581_p4 = scmp.lt.u32.totalorder %s818_s30, %s1005_s0 }
  0x1c   : > { %p578_p5 = pnand %p577_p3, %p576_p2  ;;  %p582_p7 = scmp.lt.u32.totalorder %s580_s16, %s575_s7 }
  0x1d   : > { %p584_p13 = scmp.lt.u32.totalorder %s575_s7, %s818_s30 }
  0x1e   : > { %p579_p6 = pneg %p578_p5  ;;  %p583_p10 = por %p582_p7, %p581_p4 }
  0x20   : > { %p585_p12 = por %p584_p13, %p583_p10 }
  0x22   : > { %p586_p1 = pnand %p585_p12, %p579_p6 }
  0x24   : > { %589 = shalt.err (!%p586_p1)
}
  0x25   : > { %s590_s20 = scalar_lea.vmem %s822_s4, 128  ;;  %s723_s28 = smov [#allocation2]  }
  0x26   : > { %p591_p2 = scmp.ne.s32.totalorder %s822_s4, %s590_s20  ;;  %s595_s29 = sshll.u32 %s723_s28, 4  ;;  %s596_s29 = int_to_ptr.vmem [resolvable:$false] %s595_s29 }
  0x27   : > { %s597_s3 = scalar_lea.vmem %s596_s29, 256  ;;  %p598_p9 = scmp.lt.s32.totalorder %s822_s4, %s596_s29 }
  0x28   : > { %p593_p5 = pnand %p591_p2, %p577_p3  ;;  %p599_p4 = scmp.lt.s32.totalorder %s597_s3, %s590_s20 }
  0x2a   : > { %p594_p11 = pneg %p593_p5  ;;  %p600_p7 = por %p599_p4, %p598_p9 }
  0x2c   : > { %p601_p10 = pnand %p600_p7, %p594_p11 }
  0x2e   : > { %604 = shalt.err (!%p601_p10)
}
  0x2f   : > { %s724_s7 = smov 32   ;;  %s725_s8 = smov 2  }
  0x30   : > { %492 = dma.hbm_to_vmem [thread:$0]  (!%p826_p0), %s818_s30, 128, %s822_s4, %s147_s6, %s724_s7, %s724_s7, %s725_s8  }
  0x31   : > { %p190_p9 = scmp.lt.s32.totalorder %s721_s14, 3  ;;  %s868_s18 = scalar_lea.hbm %s1006_s1, %s481_s27 }
  0x32   : > { %p1015_p11 = scmp.ge.s32.totalorder %s721_s14, 1  ;;  %s173_s20 = scalar_lea.vmem [#allocation5], %s467_s26 }
  0x33   : > { %s182_s28 = sshll.u32 %s173_s20, 4  ;;  %s170_s30 = scalar_lea.sflag [#allocation6], %s809_s25  ;;  %s878_s28 = int_to_ptr.vmem [resolvable:$true] %s182_s28 }
  0x34   : > { %p872_p12 = pnand %p1015_p11, %p190_p9  ;;  %s605_s4 = scalar_lea.hbm %s868_s18, 128 }
  0x35   : > { %p606_p1 = scmp.ne.s32.totalorder %s868_s18, %s605_s4  ;;  %s610_s29 = scalar_lea.hbm %s1006_s1, 256 }
  0x36   : > { %p611_p2 = scmp.lt.u32.totalorder %s868_s18, %s1006_s1  ;;  %p612_p5 = scmp.lt.u32.totalorder %s610_s29, %s605_s4 }
  0x37   : > { %p608_p6 = pnand %p606_p1, %p577_p3  ;;  %p614_p7 = scmp.lt.u32.totalorder %s605_s4, %s868_s18 }
  0x38   : > { %p613_p4 = por %p612_p5, %p611_p2 }
  0x39   : > { %p609_p13 = pneg %p608_p6 }
  0x3a   : > { %p615_p10 = por %p614_p7, %p613_p4 }
  0x3c   : > { %p616_p9 = pnand %p615_p10, %p609_p13 }
  0x3e   : > { %619 = shalt.err (!%p616_p9)
}
  0x3f   : > { %s620_s26 = scalar_lea.vmem %s878_s28, 128  ;;  %s726_s16 = smov [#allocation5]  }
  0x40   : > { %p621_p11 = scmp.ne.s32.totalorder %s878_s28, %s620_s26  ;;  %s625_s20 = sshll.u32 %s726_s16, 4  ;;  %s626_s20 = int_to_ptr.vmem [resolvable:$false] %s625_s20 }
  0x41   : > { %s627_s27 = scalar_lea.vmem %s626_s20, 256  ;;  %p628_p8 = scmp.lt.s32.totalorder %s878_s28, %s626_s20 }
  0x42   : > { %p623_p1 = pnand %p621_p11, %p577_p3  ;;  %p629_p2 = scmp.lt.s32.totalorder %s627_s27, %s620_s26 }
  0x44   : > { %p624_p6 = pneg %p623_p1  ;;  %p630_p5 = por %p629_p2, %p628_p8 }
  0x46   : > { %p631_p4 = pnand %p630_p5, %p624_p6 }
  0x48   : > { %634 = shalt.err (!%p631_p4)
}
  0x49   : > { %495 = dma.hbm_to_vmem [thread:$0]  (!%p826_p0), %s868_s18, 128, %s878_s28, %s170_s30, %s724_s7, %s724_s7, %s725_s8  }
  0x4a   : > { %194 = sbr.rel (%p872_p12) target bundleno = 156 (0x9c), region = 28  ;;  %s912_s4 = sand.u32 (!%p872_p12), 1, %s705_s10  }
  0x4b   : > { %s474_s6 = sshll.u32 (!%p872_p12), %s912_s4, 3  ;;  %s197_s29 = scalar_lea.sflag (!%p872_p12), [#allocation3], %s912_s4 }
  0x4c   : > { %s200_s5 = scalar_lea.vmem (!%p872_p12), [#allocation2], %s474_s6  ;;  %p1017_p8 = scmp.ne.s32.totalorder (!%p872_p12), %s1011_s21, 0 }
  0x51   : > { %688 = dma.done.wait (%p1017_p8), %s197_s29, 128  }
  0x52   : > { %690 = vsyncadd (%p1017_p8), %s197_s29, 4294967168  ;;  %s206_s25 = scalar_lea.sflag [#allocation6], %s912_s4  ;;  %s209_s7 = scalar_lea.vmem [#allocation5], %s474_s6 }
  0x53   : > { %692 = dma.done.wait (%p1017_p8), %s206_s25, 128  }
  0x54   : > { %694 = vsyncadd (%p1017_p8), %s206_s25, 4294967168  ;;  %s476_s8 = sshll.u32 %s912_s4, 1  ;;  %v727_v0 = vmov 0.0   ;;  %vm258_vm0 = vcmask 1041408   ;;  %v242_v1 = vld [vmem:[%s200_s5] sm:$0x3] }
  0x55   : > { %s926_s18 = scalar_lea.vmem [#allocation7], %s476_s8  ;;  %v243_v2 = vld [vmem:[%s200_s5 + $0x2] sm:$0x3]  ;;  %v244_v3 = vld [vmem:[%s200_s5 + $0x4] sm:$0x3]  ;;  %v250_v9 = vmul.f32 0.5, %v242_v1 }
  0x56   : > { %241 = vst [vmem:[%s926_s18] sm:$0x3] %v727_v0  ;;  %v245_v4 = vld [vmem:[%s200_s5 + $0x6] sm:$0x3]  ;;  %v246_v5 = vld [vmem:[%s209_s7] sm:$0x3]  ;;  %v251_v10 = vmul.f32 0.5, %v243_v2 }
  0x57   : > { %v247_v6 = vld [vmem:[%s209_s7 + $0x2] sm:$0x3]  ;;  %v248_v7 = vld [vmem:[%s209_s7 + $0x4] sm:$0x3]  ;;  %v249_v8 = vld [vmem:[%s209_s7 + $0x6] sm:$0x3] }
  0x58   : > { %v252_v11 = vmul.f32 0.5, %v244_v3  ;;  %v253_v12 = vmul.f32 0.5, %v245_v4  ;;  %v254_v13 = vmul.f32 0.5, %v246_v5  ;;  %v255_v14 = vmul.f32 0.5, %v247_v6  ;;  %s478_s21 = sshll.u32 %s713_s12, 5  ;;  %s352_s19 = sshll.u32 %s926_s18, 4  ;;  %s957_s19 = int_to_ptr.vmem [resolvable:$true] %s352_s19 }
  0x59   : > { %v256_v15 = vmul.f32 0.5, %v248_v7  ;;  %v257_v16 = vmul.f32 0.5, %v249_v8  ;;  %v259_v17 = vsel %vm258_vm0, %v250_v9, -inf  ;;  %v260_v18 = vsel %vm258_vm0, %v251_v10, -inf  ;;  %s955_s3 = scalar_lea.hbm %s1007_s2, %s478_s21  ;;  %s338_s15 = scalar_lea.sflag [#allocation4], %s912_s4 }
  0x5a   : > { %v261_v19 = vsel %vm258_vm0, %v252_v11, -inf  ;;  %v262_v20 = vsel %vm258_vm0, %v253_v12, -inf  ;;  %v263_v21 = vmax.f32 %v259_v17, %v260_v18  ;;  %v285_v22 = vsel %vm258_vm0, %v254_v13, -inf  ;;  %s635_s26 = scalar_lea.vmem %s957_s19, 32  ;;  %p1018_p3 = scmp.ne.s32.totalorder %s1012_s22, 0 }
  0x5b   : > { %v264_v23 = vmax.f32 %v261_v19, %v262_v20  ;;  %v286_v24 = vsel %vm258_vm0, %v255_v14, -inf  ;;  %v287_v25 = vsel %vm258_vm0, %v256_v15, -inf  ;;  %v288_v26 = vsel %vm258_vm0, %v257_v16, -inf  ;;  %p636_p0 = scmp.ne.s32.totalorder %s957_s19, %s635_s26  ;;  %s728_s12 = smov [#allocation7]  }
  0x5c   : > { %v289_v27 = vmax.f32 %v285_v22, %v286_v24  ;;  %v290_v28 = vmax.f32 %v287_v25, %v288_v26  ;;  %s639_s16 = sshll.u32 %s728_s12, 4  ;;  %s640_s16 = int_to_ptr.vmem [resolvable:$false] %s639_s16 }
  0x5d   : > { %v265_v29 = vmax.f32 %v263_v21, %v264_v23  ;;  %p637_p12 = pnand %p636_p0, %p1018_p3  ;;  %s641_s20 = scalar_lea.vmem %s640_s16, 64 }
  0x5e   : > { %v291_v30 = vmax.f32 %v289_v27, %v290_v28  ;;  %v334_v27 = vld [vmem:[%s926_s18] sm:$0x3]  ;;  %p642_p7 = scmp.lt.s32.totalorder %s957_s19, %s640_s16  ;;  %p643_p10 = scmp.lt.s32.totalorder %s641_s20, %s635_s26 }
  0x5f   : > { %v266_v31 = vsub.f32 %v250_v9, %v265_v29  ;;  %v267_v32 = vsub.f32 %v251_v10, %v265_v29  ;;  %v268_v33 = vsub.f32 %v252_v11, %v265_v29  ;;  %v269_v34 = vsub.f32 %v253_v12, %v265_v29  ;;  %p638_p13 = pneg %p637_p12 }
  0x60   : > { %v292_v35 = vsub.f32 %v254_v13, %v291_v30  ;;  %v293_v36 = vsub.f32 %v255_v14, %v291_v30  ;;  %v294_v40 = vsub.f32 %v256_v15, %v291_v30  ;;  %v295_v42 = vsub.f32 %v257_v16, %v291_v30  ;;  %p644_p9 = por %p643_p10, %p642_p7 }
  0x61   : > { %v270_v37 = vmul.f32 1.442695, %v266_v31  ;;  %v272_v38 = vmul.f32 1.442695, %v267_v32  ;;  %v274_v39 = vmul.f32 1.442695, %v268_v33 }
  0x62   : > { %v276_v41 = vmul.f32 1.442695, %v269_v34  ;;  %v296_v43 = vmul.f32 1.442695, %v292_v35  ;;  %v298_v44 = vmul.f32 1.442695, %v293_v36  ;;  %v311_v52 = vsub.f32 %v292_v35, %v266_v31  ;;  %p645_p11 = pnand %p644_p9, %p638_p13 }
  0x63   : > { %553 = vpow2.f32 %v270_v37  ;;  %v300_v45 = vmul.f32 1.442695, %v294_v40  ;;  %v302_v46 = vmul.f32 1.442695, %v295_v42  ;;  %v312_v53 = vsub.f32 %v293_v36, %v267_v32 }
  0x64   : > { %555 = vpow2.f32 %v272_v38  ;;  %v313_v0 = vsub.f32 %v294_v40, %v268_v33  ;;  %v314_v9 = vsub.f32 %v295_v42, %v269_v34 }
  0x65   : > { %557 = vpow2.f32 %v274_v39 }
  0x66   : > { %559 = vpow2.f32 %v276_v41 }
  0x67   : > { %561 = vpow2.f32 %v296_v43 }
  0x68   : > { %563 = vpow2.f32 %v298_v44 }
  0x69   : > { %565 = vpow2.f32 %v300_v45 }
  0x6a   : > { %567 = vpow2.f32 %v302_v46 }
  0x6d   : > { %v554_v47 = vpop.eup %553 }
  0x6e   : > { %v556_v48 = vpop.eup %555  ;;  %v278_v49 = vsel %vm258_vm0, %v554_v47, 0.0 }
  0x6f   : > { %v558_v50 = vpop.eup %557  ;;  %v279_v51 = vsel %vm258_vm0, %v556_v48, 0.0 }
  0x70   : > { %v560_v54 = vpop.eup %559  ;;  %v280_v55 = vadd.f32 %v279_v51, %v278_v49  ;;  %v281_v56 = vsel %vm258_vm0, %v558_v50, 0.0 }
  0x71   : > { %v562_v57 = vpop.eup %561  ;;  %v283_v58 = vsel %vm258_vm0, %v560_v54, 0.0 }
  0x72   : > { %v564_v59 = vpop.eup %563  ;;  %v282_v60 = vadd.f32 %v281_v56, %v280_v55  ;;  %v304_v61 = vsel %vm258_vm0, %v562_v57, 0.0  ;;  %v315_v1 = vmul.f32 %v562_v57, %v311_v52 }
  0x73   : > { %v566_v62 = vpop.eup %565  ;;  %v305_v63 = vsel %vm258_vm0, %v564_v59, 0.0  ;;  %v316_v2 = vmul.f32 %v564_v59, %v312_v53 }
  0x74   : > { %v568_v3 = vpop.eup %567  ;;  %v284_v4 = vadd.f32 %v283_v58, %v282_v60  ;;  %v306_v5 = vadd.f32 %v305_v63, %v304_v61  ;;  %v307_v6 = vsel %vm258_vm0, %v566_v62, 0.0  ;;  %v317_v10 = vmul.f32 %v566_v62, %v313_v0 }
  0x75   : > { %v309_v7 = vsel %vm258_vm0, %v568_v3, 0.0  ;;  %v319_v11 = vsel %vm258_vm0, %v315_v1, 0.0  ;;  %v320_v12 = vsel %vm258_vm0, %v316_v2, 0.0  ;;  %v318_v15 = vmul.f32 %v568_v3, %v314_v9 }
  0x76   : > { %v308_v8 = vadd.f32 %v307_v6, %v306_v5  ;;  %569 = vlog2.f32 %v284_v4  ;;  %v321_v14 = vadd.f32 %v320_v12, %v319_v11  ;;  %v322_v16 = vsel %vm258_vm0, %v317_v10, 0.0 }
  0x77   : > { %v324_v18 = vsel %vm258_vm0, %v318_v15, 0.0 }
  0x78   : > { %v310_v13 = vadd.f32 %v309_v7, %v308_v8  ;;  %v323_v17 = vadd.f32 %v322_v16, %v321_v14 }
  0x7a   : > { %571 = vrcp.f32 %v310_v13  ;;  %v325_v20 = vadd.f32 %v324_v18, %v323_v17 }
  0x7b   : > { %573 = vlog2.f32 %v310_v13 }
  0x80   : > { %v570_v19 = vpop.eup %569 }
  0x81   : > { %v329_v22 = vmul.f32 0.6931472, %v570_v19 }
  0x84   : > { %v572_v21 = vpop.eup %571 }
  0x85   : > { %v574_v23 = vpop.eup %573  ;;  %v327_v24 = vmul.f32 %v572_v21, %v325_v20 }
  0x86   : > { %v331_v25 = vmul.f32 0.6931472, %v574_v23 }
  0x88   : > { %v332_v26 = vsub.f32 %v329_v22, %v331_v25 }
  0x8a   : > { %v333_v28 = vadd.f32 %v332_v26, %v327_v24 }
  0x8c   : > { %v335_v29 = vadd.f32 %v334_v27, %v333_v28 }
  0x8e   : > { %336 = vst [vmem:[%s926_s18] sm:$0x3] %v335_v29 }
  0x8f   : > { %648 = shalt.err (!%p645_p11)
}
  0x90   : > { %s649_s27 = scalar_lea.hbm %s955_s3, 32  ;;  %s653_s29 = scalar_lea.hbm %s1007_s2, 64 }
  0x91   : > { %p650_p1 = scmp.ne.s32.totalorder %s955_s3, %s649_s27  ;;  %p654_p5 = scmp.lt.u32.totalorder %s955_s3, %s1007_s2 }
  0x92   : > { %p655_p4 = scmp.lt.u32.totalorder %s653_s29, %s649_s27  ;;  %p657_p0 = scmp.lt.u32.totalorder %s649_s27, %s955_s3 }
  0x93   : > { %p651_p6 = pnand %p650_p1, %p1018_p3 }
  0x94   : > { %p656_p8 = por %p655_p4, %p654_p5 }
  0x95   : > { %p652_p2 = pneg %p651_p6 }
  0x96   : > { %p658_p12 = por %p657_p0, %p656_p8 }
  0x98   : > { %p659_p13 = pnand %p658_p12, %p652_p2 }
  0x9a   : > { %662 = shalt.err (!%p659_p13)
}
  0x9b   : > { %487 = dma.vmem_to_hbm [thread:$0]  (%p1018_p3), %s957_s19, 32, %s955_s3, %s338_s15  }
  0x9c PF: > { %s364_s7 = sand.u32 1, %s701_s9   ;;  %p1019_p7 = scmp.ne.s32.totalorder %s1013_s24, 0 }
  0x9d   : > { %p1020_p10 = scmp.ge.s32.totalorder %s721_s14, 2  ;;  %s365_s8 = scalar_lea.sflag [#allocation4], %s364_s7 }
  0x9f   : > { %p497_p9 = pnand %p1020_p10, %p1019_p7 }
  0xa1   : > { %696 = dma.done.wait (!%p497_p9), %s365_s8, 32  }
  0xa2   : > { %698 = vsyncadd (!%p497_p9), %s365_s8, 4294967264  ;;  %s21_s14 = sadd.s32 1, %s721_s14   ;;  %s1021_s9 = smov %s705_s10 }
  0xa3   : > { %p18_p11 = scmp.ge.s32.totalorder %s21_s14, 4   ;;  %s1022_s10 = smov %s709_s11 }
  0xa4   : > { %s1023_s11 = smov %s800_s23  ;;  %s1024_s12 = smov %s717_s13 }
  0xa5   : > { %s1025_s13 = smov %s1027_s17  ;;  %20 = sbr.rel (!%p18_p11) target bundleno = 8 (0x8), region = 90 }
  0xac   :  { %370 = vsyncpa [#allocation3], 1 }
  0xad   :  { %372 = vsyncpa [#allocation3 + $0x1], 1 }
  0xae   :  { %373 = vsyncpa [#allocation6], 1 }
  0xaf   :  { %375 = vsyncpa [#allocation6 + $0x1], 1 }
  0xb0   :  { %376 = vsyncpa [#allocation4], 1 }
  0xb1   :  { %378 = vsyncpa [#allocation4 + $0x1], 1 }

</bundles_post_ra>
